<compile_context>
chip_gen: v7x
topology: tpu7x:2x2x1
jax: 0.10.0
libtpu: 0.0.40
codegen_flags: <defaults>
</compile_context>

<pallas_src>
import functools

import jax
import jax.numpy as jnp
from jax.experimental import pallas as pl
from jax.experimental.pallas import tpu as pltpu

K = 3  # kernel_size (module default)
S = 1  # stride       (module default)


def _round_up(x, m):
    return ((x + m - 1) // m) * m


def _min_value(dtype):
    dtype = jnp.dtype(dtype)
    if jnp.issubdtype(dtype, jnp.floating):
        return jnp.array(-jnp.inf, dtype=dtype)
    return jnp.array(jnp.iinfo(dtype).min, dtype=dtype)


def _maxpool1d_kernel(x_ref, o_ref, *, k):
    # x_ref, o_ref: (tile_rows, L) blocks in VMEM.
    x = x_ref[...]
    rows, length = x.shape
    pad = k // 2
    fill = _min_value(x.dtype)

    # out[:, j] = max_{d in [-pad, pad]} xpad[:, j + d]; start from d == 0.
    acc = x
    for d in range(1, pad + 1):
        if d >= length:
            break  # taps fall entirely outside the row -> contribute nothing
        fill_blk = jnp.full((rows, d), fill, dtype=x.dtype)
        # right tap: shifted[:, j] = x[:, j + d], out-of-range -> min value
        right = jnp.concatenate([x[:, d:], fill_blk], axis=1)
        # left tap:  shifted[:, j] = x[:, j - d], out-of-range -> min value
        left = jnp.concatenate([fill_blk, x[:, : length - d]], axis=1)
        acc = jnp.maximum(acc, jnp.maximum(left, right))

    o_ref[...] = acc.astype(o_ref.dtype)


def sp_maxpool1d(x, k=K, s=S):
    """MaxPool1d(kernel_size=k, stride=s, padding=k//2) over x of shape (N, C, L)."""
    assert s == 1, "only stride=1 (module default) is implemented"
    assert k % 2 == 1, "only odd kernel_size (same-length output) is implemented"
    n, c, length = x.shape
    rows = n * c
    x2d = x.reshape(rows, length)

    itemsize = jnp.dtype(x.dtype).itemsize
    # Sublane packing factor: 8 for 4-byte, 16 for 2-byte, 32 for 1-byte dtypes.
    sub = max(8, 32 // itemsize)

    # Keep 2 in + 2 out double-buffered tiles under ~8 MiB total, i.e. one tile
    # <= ~2 MiB -- safe on every generation's scoped-VMEM default, still large
    # enough (512+ lanes worth of data) to sit near the HBM roofline.
    max_tile_bytes = 2 * 1024 * 1024
    bytes_per_row = max(length * itemsize, 1)
    rows_cap = max(sub, (max_tile_bytes // bytes_per_row) // sub * sub)
    tile_rows = min(rows_cap, _round_up(rows, sub))
    grid = (pl.cdiv(rows, tile_rows),)

    kernel = functools.partial(_maxpool1d_kernel, k=k)
    out2d = pl.pallas_call(
        kernel,
        out_shape=jax.ShapeDtypeStruct((rows, length), x.dtype),
        grid_spec=pltpu.PrefetchScalarGridSpec(
            num_scalar_prefetch=0,
            grid=grid,
            in_specs=[pl.BlockSpec((tile_rows, length), lambda i: (i, 0))],
            out_specs=pl.BlockSpec((tile_rows, length), lambda i: (i, 0)),
        ),
        compiler_params=pltpu.CompilerParams(
            dimension_semantics=("parallel",)
        ),
    )(x2d)
    return out2d.reshape(n, c, length)


def _reference_maxpool1d(x, k=K, s=S):
    # Pure-JAX reference using reduce_window with -inf padding.
    pad = k // 2
    return jax.lax.reduce_window(
        x,
        -jnp.inf,
        jax.lax.max,
        window_dimensions=(1, 1, k),
        window_strides=(1, 1, s),
        padding=((0, 0), (0, 0), (pad, pad)),
    )


if __name__ == "__main__":
    key = jax.random.PRNGKey(0)
    # (N, C, L) input for MaxPool1d
    x = jax.random.normal(key, (2, 4, 16), dtype=jnp.float32)

    out = sp_maxpool1d(x)
    out = jax.block_until_ready(out)

    ref = _reference_maxpool1d(x)
    assert out.shape == ref.shape, (out.shape, ref.shape)
    assert jnp.allclose(out, ref), "Pallas maxpool1d mismatch vs reference"

    print("KERNEL_OK")
</pallas_src>

<mosaic_0001>
module attributes {stable_mosaic.version = 11 : i64} {
  func.func @_maxpool1d_kernel(%arg0: i32, %arg1: memref<8x16xf32, #tpu.memory_space<vmem>>, %arg2: memref<8x16xf32, #tpu.memory_space<vmem>>) attributes {dimension_semantics = [#tpu.dimension_semantics<parallel>], iteration_bounds = array<i64: 1>, scalar_prefetch = 0 : i64, scratch_operands = 0 : i64, tpu.core_type = #tpu.core_type<tc>, window_params = [{transform_indices = @transform_0, window_bounds = array<i64: 8, 16>}, {transform_indices = @transform_1, window_bounds = array<i64: 8, 16>}]} {
    %c0 = arith.constant 0 : index
    %c0_0 = arith.constant 0 : index
    %0 = vector.load %arg1[%c0, %c0_0] : memref<8x16xf32, #tpu.memory_space<vmem>>, vector<8x16xf32>
    %cst = arith.constant 0xFF800000 : f32
    %1 = vector.broadcast %cst : f32 to vector<8x1xf32>
    %2 = vector.extract_strided_slice %0 {offsets = [0, 1], sizes = [8, 15], strides = [1, 1]} : vector<8x16xf32> to vector<8x15xf32>
    %3 = tpu.concatenate %2, %1 in 1 : vector<8x15xf32>, vector<8x1xf32> -> vector<8x16xf32>
    %4 = vector.extract_strided_slice %0 {offsets = [0, 0], sizes = [8, 15], strides = [1, 1]} : vector<8x16xf32> to vector<8x15xf32>
    %5 = tpu.concatenate %1, %4 in 1 : vector<8x1xf32>, vector<8x15xf32> -> vector<8x16xf32>
    %6 = arith.maximumf %5, %3 : vector<8x16xf32>
    %7 = arith.maximumf %0, %6 : vector<8x16xf32>
    %c0_1 = arith.constant 0 : index
    %c0_2 = arith.constant 0 : index
    %8 = vector.load %arg2[%c0_1, %c0_2] : memref<8x16xf32, #tpu.memory_space<vmem>>, vector<8x16xf32>
    tpu.vector_store %arg2[%c0_1, %c0_2], %7 {strides = array<i32>} : memref<8x16xf32, #tpu.memory_space<vmem>>, vector<8x16xf32>,
    return
  }
  func.func @transform_0(%arg0: i32) -> (i32, i32) {
    %c0_i32 = arith.constant 0 : i32
    %c0_i32_0 = arith.constant 0 : i32
    return %arg0, %c0_i32 : i32, i32
  }
  func.func @transform_1(%arg0: i32) -> (i32, i32) {
    %c0_i32 = arith.constant 0 : i32
    %c0_i32_0 = arith.constant 0 : i32
    return %arg0, %c0_i32 : i32, i32
  }
}

</mosaic_0001>

<bundles_post_ra>
// kernel: tpu_custom_call.1
= control target key start
LH: loop header
LB: loop body
LE: loop exit
PB: predicated region body
PF: predicated region fallthrough
CT: control target
= control target key end

     0   :  { %6 = vsyncpa [#allocation3], 0  ;;  %s142_s0 = inlined_call_operand.hbm [shape: f32[8,16], index: 0, kind: input, shape index: {}]   ;;  %s143_s1 = inlined_call_operand.hbm [shape: f32[8,16], index: 1, kind: output, shape index: {}]  }
   0x1   :  { %7 = vsyncpa [#allocation4], 0  ;;  %s104_s6 = smov [#allocation2]   ;;  %s56_s10 = scalar_lea.hbm %s142_s0, 128 }
   0x2   :  { %s14_s7 = sshll.u32 %s104_s6, 4  ;;  %p57_p0 = scmp.ne.s32.totalorder %s142_s0, %s56_s10  ;;  %s15_s7 = int_to_ptr.vmem [resolvable:$true] %s14_s7 }
   0x3   :  { %p60_p1 = scmp.lt.u32.totalorder %s56_s10, %s142_s0 }
   0x5   :  { %p62_p2 = pnand %p60_p1, %p57_p0 }
   0x7   :  { %65 = shalt.err (!%p62_p2)
}
   0x8   :  { %s66_s15 = scalar_lea.vmem %s15_s7, 128  ;;  %p71_p4 = scmp.lt.s32.totalorder %s15_s7, %s15_s7 }
   0x9   :  { %p67_p3 = scmp.ne.s32.totalorder %s15_s7, %s66_s15  ;;  %p72_p5 = scmp.lt.s32.totalorder %s66_s15, %s66_s15 }
   0xb   :  { %p73_p6 = por %p72_p5, %p71_p4 }
   0xd   :  { %p74_p7 = pnand %p73_p6, %p67_p3 }
   0xf   :  { %77 = shalt.err (!%p74_p7)
}
  0x10   :  { %17 = dma.hbm_to_vmem [thread:$0]  %s142_s0, 128, %s15_s7, [#allocation3]  }
  0x11   :  { %100 = dma.done.wait [#allocation3], 128  }
  0x12   :  { %101 = vsyncadd [#allocation3], 4294967168  ;;  %v21_v0 = vld [vmem:[#allocation2] sm:$0xff]  ;;  %s105_s18 = smov 127   ;;  %s106_s19 = smov 1   ;;  %vm26_vm0 = vcmask 121856  }
  0x13   :  { %23 = vrot.lane.b32.xlu0 %v21_v0, %s105_s18  ;;  %vm31_vm1 = vcmask 7168   ;;  %s107_s20 = smov [#allocation5]   ;;  %vm35_vm2 = vcmask 130048  }
  0x14   :  { %s43_s21 = sshll.u32 %s107_s20, 4  ;;  %s44_s21 = int_to_ptr.vmem [resolvable:$true] %s43_s21 }
  0x15   :  { %s78_s0 = scalar_lea.vmem %s44_s21, 128  ;;  %p83_p9 = scmp.lt.s32.totalorder %s44_s21, %s44_s21 }
  0x16   :  { %p79_p8 = scmp.ne.s32.totalorder %s44_s21, %s78_s0  ;;  %p84_p10 = scmp.lt.s32.totalorder %s78_s0, %s78_s0 }
  0x17   :  { %28 = vrot.lane.b32.xlu0 %v21_v0, %s106_s19 }
  0x18   :  { %p85_p11 = por %p84_p10, %p83_p9 }
  0x1a   :  { %p86_p12 = pnand %p85_p11, %p79_p8 }
  0x85   :  { %v24_v1 = vpop.permute.xlu0 %23 }
  0x86   :  { %v27_v3 = vsel %vm26_vm0, %v24_v1, -inf }
  0x89   :  { %v29_v2 = vpop.permute.xlu0 %28 }
  0x8a   :  { %v32_v4 = vsel %vm31_vm1, -inf, %v29_v2 }
  0x8b   :  { %v33_v5 = vmax.f32 %v32_v4, %v27_v3 }
  0x8d   :  { %v34_v6 = vmax.f32 %v21_v0, %v33_v5 }
  0x8f   :  { %36 = vst.msk [vmem:[#allocation5] sm:$0xff] %vm35_vm2, %v34_v6 }
  0x90   :  { %89 = shalt.err (!%p86_p12)
}
  0x91   :  { %s90_s24 = scalar_lea.hbm %s143_s1, 128 }
  0x92   :  { %p91_p13 = scmp.ne.s32.totalorder %s143_s1, %s90_s24  ;;  %p94_p0 = scmp.lt.u32.totalorder %s90_s24, %s143_s1 }
  0x94   :  { %p96_p1 = pnand %p94_p0, %p91_p13 }
  0x96   :  { %99 = shalt.err (!%p96_p1)
}
  0x97   :  { %46 = dma.vmem_to_hbm [thread:$0]  %s44_s21, 128, %s143_s1, [#allocation4]  }
  0x98   :  { %102 = dma.done.wait [#allocation4], 128  }
  0x99   :  { %103 = vsyncadd [#allocation4], 4294967168 }
  0x9a   :  { %50 = vsyncpa [#allocation3], 1 }
  0x9b   :  { %51 = vsyncpa [#allocation4], 1 }

</bundles_post_ra>
